<compile_context>
chip_gen: v6e
topology: v6e:2x2x1
jax: 0.10.0
libtpu: 0.0.40
codegen_flags: <defaults>
</compile_context>

<pallas_src>
import functools

import jax
import jax.numpy as jnp
from jax import lax
from jax.experimental import pallas as pl
from jax.experimental.pallas import tpu as pltpu


def _round_up(x, m):
    return ((x + m - 1) // m) * m


def _vmem_capacity_bytes():
    try:
        info = pltpu.get_tpu_info()
        cap = getattr(info, "vmem_capacity_bytes", None)
        if cap:
            return int(cap)
    except Exception:
        pass
    return 128 * 1024 * 1024  # v5e/v6e default; v7x auto-detects 64 MiB above


def _choose_blocks(B, S, E, H, store_size, vmem_cap, block_b=None,
                   sub_block_b=None):
    """Pick (batch tile tb, in-kernel sub-chunk sub_tb)."""
    tb_cap = _round_up(B, 8)

    if block_b is not None:
        tb = max(8, min(_round_up(block_b, 8), tb_cap))
    else:
        # ~55% of VMEM for the double-buffered x / mask / out tiles.
        budget = int(vmem_cap * 0.55)
        per_row = 2 * S * E * store_size + 2 * S * store_size + 2 * E * 4
        weights = E * H * store_size + (2 * H + 1) * 4
        tb = (budget - weights - (4 << 20)) // max(1, per_row)
        tb = max(8, min((tb // 8) * 8, tb_cap, 1024))
        # Keep the grid length >= 2 for large batches so both v7x TensorCores
        # (and v5e/v6e megacore) get work.
        if B >= 32:
            tb = min(tb, _round_up((B + 1) // 2, 8))

    if sub_block_b is not None:
        sub_tb = max(8, min(_round_up(sub_block_b, 8), tb))
    else:
        # Bound the (sub_tb*S, H) f32 tanh intermediate to ~1 MiB.
        sub_tb = (1 << 20) // max(1, S * H * 4)
        sub_tb = max(8, min((sub_tb // 8) * 8, tb, 128))

    tb = _round_up(tb, sub_tb)  # tb must be a whole number of sub-chunks
    return tb, sub_tb


def attention_pooling_kernel(x_ref, mask_ref, w1_ref, b1_ref, w2_ref, b2_ref,
                             out_ref, *, sub_tb, n_chunks):
    # x_ref:    (TB, S, E)  storage dtype (f32 or bf16)
    # mask_ref: (TB, S)     storage dtype
    # w1_ref:   (E, H) storage dtype, b1_ref: (1, H) f32
    # w2_ref:   (1, H) f32,           b2_ref: (1, 1) f32
    # out_ref:  (TB, E)     lane-dense output slab
    w1 = w1_ref[...]                                  # resident weights
    b1 = b1_ref[...].astype(jnp.float32)              # (1, H)
    w2 = w2_ref[...].astype(jnp.float32)              # (1, H)
    b2 = b2_ref[0, 0].astype(jnp.float32)             # scalar

    s = x_ref.shape[1]
    e_dim = x_ref.shape[2]

    def chunk_body(c):
        r0 = pl.multiple_of(c * sub_tb, sub_tb)
        xc = x_ref[pl.ds(r0, sub_tb), :, :]           # (sub_tb, S, E)
        mc = mask_ref[pl.ds(r0, sub_tb), :]           # (sub_tb, S)

        # -- first linear + tanh: one (sub_tb*S, E) @ (E, H) MXU matmul, f32 acc
        h = jnp.dot(xc.reshape(sub_tb * s, e_dim), w1,
                    preferred_element_type=jnp.float32)
        h = jnp.tanh(h + b1)                          # (sub_tb*S, H) f32

        # -- second linear: one scalar logit per (b, s) row (VPU mul + reduce)
        logit = jnp.sum(h.reshape(sub_tb, s, -1) * w2, axis=-1) + b2  # (sub_tb,S)

        # -- exp -> mask -> exact normalization (matches the PyTorch module:
        #    no max-subtraction, fully-masked rows yield all-zero output).
        alpha = jnp.exp(logit) * mc.astype(jnp.float32)
        denom = jnp.sum(alpha, axis=-1, keepdims=True) + 1e-8
        alpha = alpha / denom                         # exact divide

        # -- weighted pool over candidates: VPU multiply + sublane (XLU) reduce
        #    (keeps the MXU free; avoids TB independent M=1 matmuls).
        pooled = jnp.sum(alpha[:, :, None] * xc.astype(jnp.float32), axis=1)
        out_ref[pl.ds(r0, sub_tb), :] = pooled.astype(out_ref.dtype)

    if n_chunks == 1:
        chunk_body(0)
    else:
        def body(c, carry):
            chunk_body(c)
            return carry
        lax.fori_loop(0, n_chunks, body, 0, unroll=True)


def attention_pooling(x, attn_mask, w1, b1, w2, b2, *,
                      block_b=None, sub_block_b=None, store_dtype=None):
    """AttentionPooling forward.

    x: (B, S, E), attn_mask: (B, S). Returns (B, E) in x.dtype.
    w1: (E, H) (transpose of nn.Linear(emb, hidden).weight), b1: (H,)
    w2: (H,)   (nn.Linear(hidden, 1).weight squeezed),        b2: (1,)

    store_dtype: dtype used for the HBM copies of x / W1 / mask and the MXU
      inputs (accumulation and elementwise math stay f32).  Use
      jnp.bfloat16 in production to halve HBM traffic; defaults to x.dtype.
    """
    B, S, E = x.shape
    H = w1.shape[1]
    out_dtype = x.dtype

    if store_dtype is None:
        store_dtype = x.dtype
    store_dtype = jnp.dtype(store_dtype)
    store_size = store_dtype.itemsize
    out_size = jnp.dtype(out_dtype).itemsize

    vmem_cap = _vmem_capacity_bytes()
    tb, sub_tb = _choose_blocks(B, S, E, H, store_size, vmem_cap,
                                block_b=block_b, sub_block_b=sub_block_b)
    n_chunks = tb // sub_tb
    b_pad = _round_up(B, tb)

    xs = x.astype(store_dtype)
    mask_s = attn_mask.astype(store_dtype)
    if b_pad != B:
        # Padded rows get mask = 0 -> alpha = 0 -> pooled output 0; sliced off.
        xs = jnp.pad(xs, ((0, b_pad - B), (0, 0), (0, 0)))
        mask_s = jnp.pad(mask_s, ((0, b_pad - B), (0, 0)))

    w1_s = w1.astype(store_dtype)
    b1_2d = b1.reshape(1, H).astype(jnp.float32)
    w2_2d = w2.reshape(1, H).astype(jnp.float32)
    b2_2d = b2.reshape(1, 1).astype(jnp.float32)

    # --- VMEM budget (double-buffered tiles + weights + chunk intermediates)
    x_tile = tb * S * E * store_size
    mask_tile = tb * S * store_size
    out_tile = tb * E * out_size
    w_bytes = E * H * store_size + (2 * H + 1) * 4
    interm = sub_tb * S * (2 * H + 2 * E + 8) * 4
    vmem_limit = 2 * (x_tile + mask_tile + out_tile) + w_bytes + interm + (4 << 20)
    vmem_limit = int(min(max(vmem_limit, 32 << 20), int(vmem_cap * 0.9)))

    cost = pl.CostEstimate(
        flops=int(2 * b_pad * S * E * H + 2 * b_pad * S * H + 2 * b_pad * S * E),
        transcendentals=int(b_pad * S * (H + 1)),
        bytes_accessed=int(b_pad * S * E * store_size + b_pad * S * store_size
                           + w_bytes + b_pad * E * out_size))

    kernel = functools.partial(attention_pooling_kernel,
                               sub_tb=sub_tb, n_chunks=n_chunks)

    out = pl.pallas_call(
        kernel,
        out_shape=jax.ShapeDtypeStruct((b_pad, E), out_dtype),
        grid_spec=pltpu.PrefetchScalarGridSpec(
            num_scalar_prefetch=0,
            grid=(b_pad // tb,),
            in_specs=[
                pl.BlockSpec((tb, S, E), lambda b: (b, 0, 0)),   # x block
                pl.BlockSpec((tb, S), lambda b: (b, 0)),         # mask block
                pl.BlockSpec((E, H), lambda b: (0, 0)),          # W1 (resident)
                pl.BlockSpec((1, H), lambda b: (0, 0)),          # b1
                pl.BlockSpec((1, H), lambda b: (0, 0)),          # w2
                pl.BlockSpec((1, 1), lambda b: (0, 0)),          # b2
            ],
            out_specs=pl.BlockSpec((tb, E), lambda b: (b, 0)),   # lane-dense
        ),
        compiler_params=pltpu.CompilerParams(
            dimension_semantics=("parallel",),
            vmem_limit_bytes=vmem_limit),
        cost_estimate=cost,
    )(xs, mask_s, w1_s, b1_2d, w2_2d, b2_2d)
    return out[:B]


def reference(x, attn_mask, w1, b1, w2, b2):
    hp = jax.lax.Precision.HIGHEST
    e = jnp.tanh(jnp.einsum("bse,eh->bsh", x, w1, precision=hp) + b1)
    alpha = jnp.exp(jnp.einsum("bsh,h->bs", e, w2, precision=hp) + b2)
    alpha = alpha * attn_mask
    alpha = alpha / (jnp.sum(alpha, axis=1, keepdims=True) + 1e-8)
    return jnp.einsum("bse,bs->be", x, alpha, precision=hp)


if __name__ == "__main__":
    B, S, E, H = 20, 8, 32, 16

    key = jax.random.PRNGKey(0)
    kx, km, k1, k2, k3, k4 = jax.random.split(key, 6)

    x = jax.random.normal(kx, (B, S, E), dtype=jnp.float32)
    # deterministic 0/1 mask with at least one valid position per row
    attn_mask = (jax.random.uniform(km, (B, S)) > 0.3).astype(jnp.float32)
    attn_mask = attn_mask.at[:, 0].set(1.0)

    # Parameters (nn.Linear(emb_size, hidden_size).weight is (H, E); we store
    # its transpose (E, H) so the kernel does x @ W1 directly).
    w1 = jax.random.normal(k1, (E, H), dtype=jnp.float32) * 0.1
    b1 = jax.random.normal(k2, (H,), dtype=jnp.float32) * 0.1
    w2 = jax.random.normal(k3, (H,), dtype=jnp.float32) * 0.1
    b2 = jax.random.normal(k4, (1,), dtype=jnp.float32) * 0.1

    ref_full = reference(x, attn_mask, w1, b1, w2, b2)
    TOL = dict(atol=2e-3, rtol=2e-3)

    # 1) Multi-step grid + in-kernel chunk loop (tb=16, sub_tb=8, B padded
    #    20 -> 32, grid = 2, n_chunks = 2).
    out = jax.block_until_ready(
        attention_pooling(x, attn_mask, w1, b1, w2, b2,
                          block_b=16, sub_block_b=8))
    assert out.shape == (B, E)
    assert jnp.allclose(out, ref_full, **TOL), (
        f"max err {jnp.max(jnp.abs(out - ref_full))}")

    # 2) Default auto-sized path (single block, single chunk at this shape).
    out2 = jax.block_until_ready(
        attention_pooling(x, attn_mask, w1, b1, w2, b2))
    assert jnp.allclose(out2, ref_full, **TOL), (
        f"max err {jnp.max(jnp.abs(out2 - ref_full))}")

    # 3) bf16 storage path (HBM/MXU in bf16, f32 accumulation): compare against
    #    the reference evaluated on the bf16-rounded x / W1.
    out3 = jax.block_until_ready(
        attention_pooling(x, attn_mask, w1, b1, w2, b2,
                          store_dtype=jnp.bfloat16))
    ref_bf16 = reference(x.astype(jnp.bfloat16).astype(jnp.float32), attn_mask,
                         w1.astype(jnp.bfloat16).astype(jnp.float32),
                         b1, w2, b2)
    assert out3.shape == (B, E)
    assert jnp.allclose(out3, ref_bf16, **TOL), (
        f"max err {jnp.max(jnp.abs(out3 - ref_bf16))}")

    # 4) Tiny batch (B=2, padded to 8) as in the module's doc example.
    out4 = jax.block_until_ready(
        attention_pooling(x[:2], attn_mask[:2], w1, b1, w2, b2))
    ref4 = reference(x[:2], attn_mask[:2], w1, b1, w2, b2)
    assert out4.shape == (2, E)
    assert jnp.allclose(out4, ref4, **TOL), (
        f"max err {jnp.max(jnp.abs(out4 - ref4))}")

    print("KERNEL_OK")
</pallas_src>

<mosaic_0001>
module attributes {stable_mosaic.version = 11 : i64} {
  func.func @attention_pooling_kernel(%arg0: i32, %arg1: memref<16x8x32xf32, #tpu.memory_space<vmem>>, %arg2: memref<16x8xf32, #tpu.memory_space<vmem>>, %arg3: memref<32x16xf32, #tpu.memory_space<vmem>>, %arg4: memref<1x16xf32, #tpu.memory_space<vmem>>, %arg5: memref<1x16xf32, #tpu.memory_space<vmem>>, %arg6: memref<1x1xf32, #tpu.memory_space<vmem>>, %arg7: memref<16x32xf32, #tpu.memory_space<vmem>>) attributes {dimension_semantics = [#tpu.dimension_semantics<parallel>], iteration_bounds = array<i64: 2>, scalar_prefetch = 0 : i64, scratch_operands = 0 : i64, tpu.core_type = #tpu.core_type<tc>, window_params = [{transform_indices = @transform_0, window_bounds = array<i64: 16, 8, 32>}, {transform_indices = @transform_1, window_bounds = array<i64: 16, 8>}, {pipeline_mode = #tpu.pipeline_mode<synchronous>, transform_indices = @transform_2, window_bounds = array<i64: 32, 16>}, {pipeline_mode = #tpu.pipeline_mode<synchronous>, transform_indices = @transform_3, window_bounds = array<i64: 1, 16>}, {pipeline_mode = #tpu.pipeline_mode<synchronous>, transform_indices = @transform_4, window_bounds = array<i64: 1, 16>}, {pipeline_mode = #tpu.pipeline_mode<synchronous>, transform_indices = @transform_5, window_bounds = array<i64: 1, 1>}, {transform_indices = @transform_6, window_bounds = array<i64: 16, 32>}]} {
    %c0 = arith.constant 0 : index
    %c0_0 = arith.constant 0 : index
    %0 = vector.load %arg3[%c0, %c0_0] : memref<32x16xf32, #tpu.memory_space<vmem>>, vector<32x16xf32>
    %c0_1 = arith.constant 0 : index
    %c0_2 = arith.constant 0 : index
    %1 = vector.load %arg4[%c0_1, %c0_2] : memref<1x16xf32, #tpu.memory_space<vmem>>, vector<1x16xf32>
    %c0_3 = arith.constant 0 : index
    %c0_4 = arith.constant 0 : index
    %2 = vector.load %arg5[%c0_3, %c0_4] : memref<1x16xf32, #tpu.memory_space<vmem>>, vector<1x16xf32>
    %c0_5 = arith.constant 0 : index
    %c0_6 = arith.constant 0 : index
    %3 = vector.load %arg6[%c0_5, %c0_6] : memref<1x1xf32, #tpu.memory_space<vmem>>, vector<1x1xf32>
    %4 = vector.extract %3[0, 0] : f32 from vector<1x1xf32>
    %c0_i32 = arith.constant 0 : i32
    %c8_i32 = arith.constant 8 : i32
    %5 = arith.muli %c0_i32, %c8_i32 : i32
    %6 = tpu.assume_multiple %5, 8 : i32
    %7 = arith.index_cast %6 : i32 to index
    %c0_7 = arith.constant 0 : index
    %c0_8 = arith.constant 0 : index
    %8 = vector.load %arg1[%7, %c0_7, %c0_8] : memref<16x8x32xf32, #tpu.memory_space<vmem>>, vector<8x8x32xf32>
    %9 = arith.index_cast %6 : i32 to index
    %c0_9 = arith.constant 0 : index
    %10 = vector.load %arg2[%9, %c0_9] : memref<16x8xf32, #tpu.memory_space<vmem>>, vector<8x8xf32>
    %11 = vector.shape_cast %8 : vector<8x8x32xf32> to vector<64x32xf32>
    %cst = arith.constant dense<0.000000e+00> : vector<64x16xf32>
    %12 = tpu.matmul %11, %0, %cst {dimension_numbers = #tpu.dot_dimension_numbers<[1], [0], [0], [1], [0, 0, 1, 1], [], []>} : vector<64x32xf32>, vector<32x16xf32>, vector<64x16xf32> -> vector<64x16xf32>
    %13 = vector.broadcast %1 : vector<1x16xf32> to vector<64x16xf32>
    %14 = arith.addf %12, %13 : vector<64x16xf32>
    %15 = math.tanh %14 : vector<64x16xf32>
    %16 = vector.shape_cast %15 : vector<64x16xf32> to vector<8x8x16xf32>
    %17 = vector.shape_cast %2 : vector<1x16xf32> to vector<1x1x16xf32>
    %18 = vector.broadcast %17 : vector<1x1x16xf32> to vector<8x8x16xf32>
    %19 = arith.mulf %16, %18 : vector<8x8x16xf32>
    %cst_10 = arith.constant dense<0.000000e+00> : vector<8x8xf32>
    %20 = vector.multi_reduction <add>, %19, %cst_10 [2] : vector<8x8x16xf32> to vector<8x8xf32>
    %21 = vector.broadcast %4 : f32 to vector<8x8xf32>
    %22 = arith.addf %20, %21 : vector<8x8xf32>
    %23 = math.exp %22 : vector<8x8xf32>
    %24 = arith.mulf %23, %10 : vector<8x8xf32>
    %cst_11 = arith.constant dense<0.000000e+00> : vector<8xf32>
    %25 = vector.multi_reduction <add>, %24, %cst_11 [1] : vector<8x8xf32> to vector<8xf32>
    %26 = vector.shape_cast %25 : vector<8xf32> to vector<8x1xf32>
    %cst_12 = arith.constant 9.99999993E-9 : f32
    %27 = vector.broadcast %cst_12 : f32 to vector<8x1xf32>
    %28 = arith.addf %26, %27 : vector<8x1xf32>
    %29 = vector.broadcast %28 : vector<8x1xf32> to vector<8x8xf32>
    %30 = arith.divf %24, %29 : vector<8x8xf32>
    %31 = vector.shape_cast %30 : vector<8x8xf32> to vector<8x8x1xf32>
    %32 = vector.broadcast %31 : vector<8x8x1xf32> to vector<8x8x32xf32>
    %33 = arith.mulf %32, %8 : vector<8x8x32xf32>
    %cst_13 = arith.constant dense<0.000000e+00> : vector<8x32xf32>
    %34 = vector.multi_reduction <add>, %33, %cst_13 [1] : vector<8x8x32xf32> to vector<8x32xf32>
    %35 = arith.index_cast %6 : i32 to index
    %c0_14 = arith.constant 0 : index
    %36 = vector.load %arg7[%35, %c0_14] : memref<16x32xf32, #tpu.memory_space<vmem>>, vector<8x32xf32>
    tpu.vector_store %arg7[%35, %c0_14], %34 {strides = array<i32>} : memref<16x32xf32, #tpu.memory_space<vmem>>, vector<8x32xf32>,
    %c1_i32 = arith.constant 1 : i32
    %c8_i32_15 = arith.constant 8 : i32
    %37 = arith.muli %c1_i32, %c8_i32_15 : i32
    %38 = tpu.assume_multiple %37, 8 : i32
    %39 = arith.index_cast %38 : i32 to index
    %c0_16 = arith.constant 0 : index
    %c0_17 = arith.constant 0 : index
    %40 = vector.load %arg1[%39, %c0_16, %c0_17] : memref<16x8x32xf32, #tpu.memory_space<vmem>>, vector<8x8x32xf32>
    %41 = arith.index_cast %38 : i32 to index
    %c0_18 = arith.constant 0 : index
    %42 = vector.load %arg2[%41, %c0_18] : memref<16x8xf32, #tpu.memory_space<vmem>>, vector<8x8xf32>
    %43 = vector.shape_cast %40 : vector<8x8x32xf32> to vector<64x32xf32>
    %cst_19 = arith.constant dense<0.000000e+00> : vector<64x16xf32>
    %44 = tpu.matmul %43, %0, %cst_19 {dimension_numbers = #tpu.dot_dimension_numbers<[1], [0], [0], [1], [0, 0, 1, 1], [], []>} : vector<64x32xf32>, vector<32x16xf32>, vector<64x16xf32> -> vector<64x16xf32>
    %45 = vector.broadcast %1 : vector<1x16xf32> to vector<64x16xf32>
    %46 = arith.addf %44, %45 : vector<64x16xf32>
    %47 = math.tanh %46 : vector<64x16xf32>
    %48 = vector.shape_cast %47 : vector<64x16xf32> to vector<8x8x16xf32>
    %49 = vector.shape_cast %2 : vector<1x16xf32> to vector<1x1x16xf32>
    %50 = vector.broadcast %49 : vector<1x1x16xf32> to vector<8x8x16xf32>
    %51 = arith.mulf %48, %50 : vector<8x8x16xf32>
    %cst_20 = arith.constant dense<0.000000e+00> : vector<8x8xf32>
    %52 = vector.multi_reduction <add>, %51, %cst_20 [2] : vector<8x8x16xf32> to vector<8x8xf32>
    %53 = vector.broadcast %4 : f32 to vector<8x8xf32>
    %54 = arith.addf %52, %53 : vector<8x8xf32>
    %55 = math.exp %54 : vector<8x8xf32>
    %56 = arith.mulf %55, %42 : vector<8x8xf32>
    %cst_21 = arith.constant dense<0.000000e+00> : vector<8xf32>
    %57 = vector.multi_reduction <add>, %56, %cst_21 [1] : vector<8x8xf32> to vector<8xf32>
    %58 = vector.shape_cast %57 : vector<8xf32> to vector<8x1xf32>
    %cst_22 = arith.constant 9.99999993E-9 : f32
    %59 = vector.broadcast %cst_22 : f32 to vector<8x1xf32>
    %60 = arith.addf %58, %59 : vector<8x1xf32>
    %61 = vector.broadcast %60 : vector<8x1xf32> to vector<8x8xf32>
    %62 = arith.divf %56, %61 : vector<8x8xf32>
    %63 = vector.shape_cast %62 : vector<8x8xf32> to vector<8x8x1xf32>
    %64 = vector.broadcast %63 : vector<8x8x1xf32> to vector<8x8x32xf32>
    %65 = arith.mulf %64, %40 : vector<8x8x32xf32>
    %cst_23 = arith.constant dense<0.000000e+00> : vector<8x32xf32>
    %66 = vector.multi_reduction <add>, %65, %cst_23 [1] : vector<8x8x32xf32> to vector<8x32xf32>
    %67 = arith.index_cast %38 : i32 to index
    %c0_24 = arith.constant 0 : index
    %68 = vector.load %arg7[%67, %c0_24] : memref<16x32xf32, #tpu.memory_space<vmem>>, vector<8x32xf32>
    tpu.vector_store %arg7[%67, %c0_24], %66 {strides = array<i32>} : memref<16x32xf32, #tpu.memory_space<vmem>>, vector<8x32xf32>,
    %c2_i32 = arith.constant 2 : i32
    return
  }
  func.func @transform_0(%arg0: i32) -> (i32, i32, i32) {
    %c0_i32 = arith.constant 0 : i32
    %c0_i32_0 = arith.constant 0 : i32
    %c0_i32_1 = arith.constant 0 : i32
    return %arg0, %c0_i32, %c0_i32_0 : i32, i32, i32
  }
  func.func @transform_1(%arg0: i32) -> (i32, i32) {
    %c0_i32 = arith.constant 0 : i32
    %c0_i32_0 = arith.constant 0 : i32
    return %arg0, %c0_i32 : i32, i32
  }
  func.func @transform_2(%arg0: i32) -> (i32, i32) {
    %c0_i32 = arith.constant 0 : i32
    %c0_i32_0 = arith.constant 0 : i32
    %c0_i32_1 = arith.constant 0 : i32
    return %c0_i32, %c0_i32_0 : i32, i32
  }
  func.func @transform_3(%arg0: i32) -> (i32, i32) {
    %c0_i32 = arith.constant 0 : i32
    %c0_i32_0 = arith.constant 0 : i32
    %c0_i32_1 = arith.constant 0 : i32
    return %c0_i32, %c0_i32_0 : i32, i32
  }
  func.func @transform_4(%arg0: i32) -> (i32, i32) {
    %c0_i32 = arith.constant 0 : i32
    %c0_i32_0 = arith.constant 0 : i32
    %c0_i32_1 = arith.constant 0 : i32
    return %c0_i32, %c0_i32_0 : i32, i32
  }
  func.func @transform_5(%arg0: i32) -> (i32, i32) {
    %c0_i32 = arith.constant 0 : i32
    %c0_i32_0 = arith.constant 0 : i32
    %c0_i32_1 = arith.constant 0 : i32
    return %c0_i32, %c0_i32_0 : i32, i32
  }
  func.func @transform_6(%arg0: i32) -> (i32, i32) {
    %c0_i32 = arith.constant 0 : i32
    %c0_i32_0 = arith.constant 0 : i32
    return %arg0, %c0_i32 : i32, i32
  }
}

</mosaic_0001>

<bundles_post_ra>
// kernel: tpu_custom_call.1
= control target key start
LH: loop header
LB: loop body
LE: loop exit
PB: predicated region body
PF: predicated region fallthrough
CT: control target
= control target key end

     0   :  { %s2456_s0 = inlined_call_operand.hbm [shape: f32[32,8,32], index: 0, kind: input, shape index: {}]   ;;  %s2457_s1 = inlined_call_operand.vmem [shape: f32[32,8], index: 1, kind: input, shape index: {}]   ;;  %s2458_s2 = inlined_call_operand.vmem [shape: f32[32,16], index: 2, kind: input, shape index: {}]   ;;  %s2459_s3 = inlined_call_operand.vmem [shape: f32[1,16], index: 3, kind: input, shape index: {}]   ;;  %s2460_s4 = inlined_call_operand.vmem [shape: f32[1,16], index: 4, kind: input, shape index: {}]   ;;  %s2461_s5 = inlined_call_operand.<no memory space> [shape: f32[1,1], index: 5, kind: input, shape index: {}]   ;;  %s2462_s6 = inlined_call_operand.hbm [shape: f32[32,32], index: 6, kind: output, shape index: {}]  }
   0x1   :  { %v11_v0 = vstv %s2461_s5 }
   0x2   :  { %12 = vst [vmem:[#allocation2] sm:$0x1] %v11_v0 }
   0x3   :  { %13 = vsyncpa [#allocation4], 0 }
   0x4   :  { %15 = vsyncpa [#allocation4 + $0x1], 0 }
   0x5   :  { %16 = vsyncpa [#allocation5], 0 }
   0x6   :  { %18 = vsyncpa [#allocation5 + $0x1], 0  ;;  %s1901_s23 = smov 0   ;;  %s1903_s24 = smov 0  }
   0x7   :  { %s1905_s25 = smov 0   ;;  %s1907_s26 = smov 0  }
   0x8 LB: > { %s1922_s5 = sadd.s32 4294967295, %s1854_s26   ;;  %s1493_s27 = sadd.s32 4294967294, %s1854_s26   ;;  %s1854_s26 = sphi %s1907_s26, %s2477_s26   ;;  %s1850_s25 = sphi %s1905_s25, %s2476_s25   ;;  %s1846_s24 = sphi %s1903_s24, %s2475_s24   ;;  %s1842_s23 = sphi %s1901_s23, %s2474_s23  }
   0x9   : > { %s1926_s28 = sadd.s32 1, %s1854_s26   ;;  %s31_s29 = sadd.s32 1, %s1850_s25 }
   0xa   : > { %s28_s30 = ssub.s32 %s1854_s26, %s1926_s28  ;;  %p38_p0 = scmp.ne.s32.totalorder %s1850_s25, %s1846_s24 }
   0xb   : > { %p29_p1 = scmp.eq.s32.totalorder %s28_s30, 0  ;;  %p39_p2 = scmp.eq.s32.totalorder %s1854_s26, 0 }
   0xc   : > { %p44_p3 = scmp.ne.s32.totalorder %s1846_s24, %s1842_s23  ;;  %p45_p4 = scmp.eq.s32.totalorder %s1922_s5, 0 }
   0xd   : > { %s1938_s7 = scalar_select %p29_p1, %s1850_s25, %s31_s29  }
   0xe   : > { %p1940_p5 = por %p39_p2, %p38_p0  ;;  %p1944_p6 = por %p45_p4, %p44_p3 }
   0xf   : > { %p178_p7 = scmp.eq.s32.totalorder %s1922_s5, 1  ;;  %p184_p8 = scmp.eq.s32.totalorder %s1493_s27, 1 }
  0x10   : > { %s2466_s9 = scalar_select %p1944_p6, 1, 0 }
  0x11   : > { %p1617_p10 = scmp.lt.s32.totalorder %s1854_s26, 2  ;;  %p1951_p11 = por %p178_p7, %p38_p0 }
  0x12   : > { %p1955_p12 = por %p184_p8, %p44_p3  ;;  %s216_s12 = sand.u32 1, %s1850_s25  }
  0x13   : > { %s2467_s10 = scalar_select %p1951_p11, 1, 0 }
  0x14   : > { %s2468_s11 = scalar_select %p1955_p12, 1, 0 }
  0x15   : > { %s1537_s13 = sshll.u32 %s1854_s26, 11  ;;  %s1496_s14 = sshll.u32 %s216_s12, 7 }
  0x16   : > { %s1964_s17 = scalar_lea.hbm %s2456_s0, %s1537_s13  ;;  %s220_s18 = scalar_lea.vmem [#allocation3], %s1496_s14 }
  0x17   : > { %s227_s19 = sshll.u32 %s220_s18, 4  ;;  %p1968_p13 = pnand %p1617_p10, %p1940_p5  ;;  %s1972_s19 = int_to_ptr.vmem [resolvable:$true] %s227_s19 }
  0x18   : > { %s1974_s21 = scalar_lea.sflag [#allocation4], %s216_s12  ;;  %s1762_s22 = scalar_lea.hbm %s1964_s17, 2048 }
  0x19   : > { %p1763_p0 = scmp.ne.s32.totalorder %s1964_s17, %s1762_s22  ;;  %p1764_p1 = pneg %p1968_p13 }
  0x1a   : > { %s1767_s30 = scalar_lea.hbm %s2456_s0, 4096  ;;  %p1768_p4 = scmp.lt.s32.totalorder %s1964_s17, %s2456_s0 }
  0x1b   : > { %p1765_p2 = pnand %p1764_p1, %p1763_p0  ;;  %p1769_p5 = scmp.lt.s32.totalorder %s1767_s30, %s1762_s22 }
  0x1d   : > { %p1766_p3 = pneg %p1765_p2  ;;  %p1770_p7 = por %p1769_p5, %p1768_p4 }
  0x1f   : > { %p1771_p8 = pnand %p1770_p7, %p1766_p3 }
  0x21   : > { %1774 = shalt.err (!%p1771_p8)
}
  0x22   : > { %s1775_s12 = scalar_lea.vmem %s1972_s19, 2048  ;;  %s1856_s14 = smov [#allocation3]  }
  0x23   : > { %p1776_p10 = scmp.ne.s32.totalorder %s1972_s19, %s1775_s12  ;;  %s1780_s15 = sshll.u32 %s1856_s14, 4  ;;  %s1781_s15 = int_to_ptr.vmem [resolvable:$false] %s1780_s15 }
  0x24   : > { %s1782_s16 = scalar_lea.vmem %s1781_s15, 4096  ;;  %p1783_p2 = scmp.lt.s32.totalorder %s1972_s19, %s1781_s15 }
  0x25   : > { %p1778_p9 = pnand %p1776_p10, %p1764_p1  ;;  %p1784_p12 = scmp.lt.s32.totalorder %s1782_s16, %s1775_s12 }
  0x27   : > { %p1779_p0 = pneg %p1778_p9  ;;  %p1785_p11 = por %p1784_p12, %p1783_p2 }
  0x29   : > { %p1786_p6 = pnand %p1785_p11, %p1779_p0 }
  0x2b   : > { %1789 = shalt.err (!%p1786_p6)
}
  0x2c   : > { %s1857_s18 = smov 128   ;;  %s1858_s22 = smov 8  }
  0x2d   : > { %1612 = dma.hbm_to_vmem [thread:$0]  (!%p1968_p13), %s1964_s17, 2048, %s1972_s19, %s1974_s21, %s1857_s18, %s1857_s18, %s1858_s22  }
  0x2e   : > { %p1499_p9 = scmp.ge.s32.totalorder %s1854_s26, 1  ;;  %p244_p1 = scmp.lt.s32.totalorder %s1854_s26, 3 }
  0x30   : > { %p245_p3 = pnand %p1499_p9, %p244_p1 }
  0x31   : > { %s1998_s27 = sand.u32 (!%p245_p3), 1, %s1846_s24   ;;  %p2470_p6 = scmp.ne.s32.totalorder (!%p245_p3), %s2466_s9, 0 }
  0x32   : > { %248 = sbr.rel (%p245_p3) target bundleno = 939 (0x3ab), region = 44  ;;  %s1500_s29 = sshll.u32 (!%p245_p3), %s1998_s27, 7 }
  0x33   : > { %s251_s30 = scalar_lea.sflag (!%p245_p3), [#allocation4], %s1998_s27  ;;  %s2002_s8 = scalar_lea.vmem (!%p245_p3), [#allocation3], %s1500_s29 }
  0x37   : > { %1833 = dma.done.wait (%p2470_p6), %s251_s30, 2048  }
  0x38   : > { %1835 = vsyncadd (%p2470_p6), %s251_s30, 4294965248  ;;  %s1502_s17 = sshll.u32 %s1922_s5, 1  ;;  %v524_v1 = vlaneseq  ;;  %v299_v2 = vld [vmem:[%s2458_s2 + $0x18] sm:$0xff]  ;;  %v298_v3 = vld [vmem:[%s2458_s2 + $0x10] sm:$0xff]  ;;  %vm321_vm0 = vcmask 261120   ;;  %vm473_vm1 = vcmask 130048  }
  0x39   : > { %p290_p11 = scmp.lt.s32.totalorder %s1502_s17, 3  ;;  %1563 = vmatprep.subr.mxu0 %v299_v2  ;;  %1583 = vmatprep.subr.mxu1 %v299_v2  ;;  %v297_v5 = vld [vmem:[%s2458_s2 + $0x8] sm:$0xff]  ;;  %v296_v6 = vld [vmem:[%s2458_s2] sm:$0xff]  ;;  %v2046_v14 = vld [vmem:[%s2002_s8 + $0x10] sm:$0xff]  ;;  %vm662_vm2 = vcmask 1041409   ;;  %vm664_vm3 = vcmask 1042434  }
  0x3a   : > { %v2016_v4 = vshrl.u32 %v524_v1, 7  ;;  %1564 = vmatpush3.msra.mxu0 %v299_v2  ;;  %1584 = vmatpush3.msra.mxu1 %v299_v2  ;;  %v2031_v8 = vld [vmem:[%s2002_s8] sm:$0xff]  ;;  %v2040_v12 = vld [vmem:[%s2002_s8 + $0x8] sm:$0xff]  ;;  %v1516_v15 = vld [vmem:[%s2002_s8 + $0x50] sm:$0xff]  ;;  %vm666_vm4 = vcmask 1043459   ;;  %vm668_vm5 = vcmask 1044484  }
  0x3b   : > { %s2479_s17 = smov (!%p290_p11, %s1502_s17), 3  ;;  %1565 = vmatprep.subr.mxu0 %v298_v3  ;;  %1585 = vmatprep.subr.mxu1 %v298_v3  ;;  %v1514_v9 = vld [vmem:[%s2002_s8 + $0x40] sm:$0xff]  ;;  %v1515_v13 = vld [vmem:[%s2002_s8 + $0x48] sm:$0xff]  ;;  %v2065_v20 = vld [vmem:[%s2002_s8 + $0x18] sm:$0xff]  ;;  %vm670_vm6 = vcmask 1045509   ;;  %vm672_vm7 = vcmask 1046534  }
  0x3c   : > { %s1503_s12 = sshll.u32 %s2479_s17, 3  ;;  %1566 = vmatpush3.msra.mxu0 %v298_v3  ;;  %1586 = vmatpush3.msra.mxu1 %v298_v3  ;;  %v2028_v7 = vsub.s32 1, %v2016_v4  ;;  %v2037_v11 = vsub.s32 0, %v2016_v4  ;;  %v2060_v19 = vsub.s32 2, %v2016_v4  ;;  %v1517_v21 = vld [vmem:[%s2002_s8 + $0x58] sm:$0xff]  ;;  %v2070_v22 = vld [vmem:[%s2002_s8 + $0x20] sm:$0xff] }
  0x3d   : > { %s293_s18 = scalar_lea.vmem %s2457_s1, %s1503_s12  ;;  %1567 = vmatprep.subr.mxu0 %v297_v5  ;;  %1587 = vmatprep.subr.mxu1 %v297_v5  ;;  %v1518_v23 = vld [vmem:[%s2002_s8 + $0x60] sm:$0xff]  ;;  %v2081_v26 = vsub.s32 3, %v2016_v4  ;;  %v2086_v27 = vld [vmem:[%s2002_s8 + $0x28] sm:$0xff]  ;;  %v2091_v29 = vld [vmem:[%s2002_s8 + $0x30] sm:$0xff]  ;;  %v2102_v33 = vsub.s32 4, %v2016_v4  ;;  %v2119_v38 = vsub.s32 5, %v2016_v4 }
  0x3e   : > { %1568 = vmatpush3.msra.mxu0 %v297_v5  ;;  %1588 = vmatpush3.msra.mxu1 %v297_v5  ;;  %v2034_v10 = vld [vmem:[%s293_s18] sm:$0xff]  ;;  %v2054_v18 = vld [vmem:[%s293_s18 + $0x8] sm:$0xff]  ;;  %v1520_v30 = vld [vmem:[%s2002_s8 + $0x70] sm:$0xff]  ;;  %v2126_v41 = vsub.s32 6, %v2016_v4  ;;  %vm674_vm8 = vcmask 1047559   ;;  %vm677_vm9 = vcmask 64512  }
  0x3f   : > { %1569 = vmatprep.subr.mxu0 %v296_v6  ;;  %1589 = vmatprep.subr.mxu1 %v296_v6  ;;  %v534_v16 = vrot.slane %v2034_v10, %v2028_v7  ;;  %v527_v17 = vrot.slane %v2034_v10, %v2037_v11  ;;  %v1069_v24 = vrot.slane %v2054_v18, %v2037_v11  ;;  %v1519_v28 = vld [vmem:[%s2002_s8 + $0x68] sm:$0xff]  ;;  %v2107_v34 = vld [vmem:[%s2002_s8 + $0x38] sm:$0xff]  ;;  %s1501_s13 = sshll.u32 %s1998_s27, 4  ;;  %p2471_p13 = scmp.ne.s32.totalorder %s2467_s10, 0 }
  0x40   : > { %1570 = vmatpush3.msra.mxu0 %v296_v6  ;;  %1571 = vmatprep.mubr.msk.f32.mxu0 %vm321_vm0, %v2031_v8  ;;  %v541_v25 = vrot.slane %v2034_v10, %v2060_v19  ;;  %v1076_v31 = vrot.slane %v2054_v18, %v2028_v7  ;;  %v548_v32 = vrot.slane %v2034_v10, %v2081_v26  ;;  %v1521_v35 = vld [vmem:[%s2002_s8 + $0x78] sm:$0xff]  ;;  %s2390_s12 = scalar_lea.vmem [#allocation6], %s1501_s13  ;;  %s1860_s22 = smov [#allocation6]  }
  0x41   : > { %1590 = vmatpush3.msra.mxu1 %v296_v6  ;;  %1591 = vmatprep.mubr.msk.f32.mxu1 %vm321_vm0, %v1514_v9  ;;  %v1083_v36 = vrot.slane %v2054_v18, %v2060_v19  ;;  %v555_v37 = vrot.slane %v2034_v10, %v2102_v33  ;;  %v1090_v39 = vrot.slane %v2054_v18, %v2081_v26  ;;  %v302_v46 = vld [vmem:[#allocation2] sm:$0x1]  ;;  %s1407_s9 = sshll.u32 %s2390_s12, 4  ;;  %s1794_s29 = sshll.u32 %s1860_s22, 4  ;;  %s2410_s9 = int_to_ptr.vmem [resolvable:$true] %s1407_s9  ;;  %s1795_s29 = int_to_ptr.vmem [resolvable:$false] %s1794_s29 }
  0x42   : > { %1572 = vmatmul.mubr.msk.f32.vlgmr.msra.gmra.mxu0 %vm321_vm0, %v2040_v12  ;;  %1592 = vmatmul.mubr.msk.f32.vlgmr.msra.gmra.mxu1 %vm321_vm0, %v1515_v13  ;;  %v562_v40 = vrot.slane %v2034_v10, %v2119_v38  ;;  %v1097_v42 = vrot.slane %v2054_v18, %v2102_v33  ;;  %v569_v43 = vrot.slane %v2034_v10, %v2126_v41  ;;  %v2139_v47 = vld [vmem:[%s2459_s3] ss:$0 sm:$0xff]  ;;  %s1790_s18 = scalar_lea.vmem %s2410_s9, 256  ;;  %s1796_s30 = scalar_lea.vmem %s1795_s29, 512 }
  0x43   : > { %1574 = vmatprep.mubr.msk.f32.mxu0 %vm321_vm0, %v2046_v14  ;;  %1594 = vmatprep.mubr.msk.f32.mxu1 %vm321_vm0, %v1516_v15  ;;  %v1104_v44 = vrot.slane %v2054_v18, %v2119_v38  ;;  %v1111_v45 = vrot.slane %v2054_v18, %v2126_v41  ;;  %1603 = vpush %v302_v46  ;;  %v2154_v13 = vld [vmem:[%s2460_s4] ss:$0 sm:$0xff]  ;;  %p1791_p12 = scmp.ne.s32.totalorder %s2410_s9, %s1790_s18  ;;  %p1797_p7 = scmp.lt.s32.totalorder %s2410_s9, %s1795_s29 }
  0x44   : > { %536 = vbcast.lane.b32.xlu1 %v534_v16, 256  ;;  %529 = vbcast.lane.b32.xlu0 %v527_v17, 256  ;;  %p1798_p8 = scmp.lt.s32.totalorder %s1796_s30, %s1790_s18 }
  0x45   : > { %p1792_p4 = pnand %p1791_p12, %p2471_p13 }
  0x46   : > { %1575 = vmatmul.mubr.msk.f32.gmra.mxu0 %vm321_vm0, %v2065_v20  ;;  %1595 = vmatmul.mubr.msk.f32.gmra.mxu1 %vm321_vm0, %v1517_v21  ;;  %p1799_p10 = por %p1798_p8, %p1797_p7 }
  0x47   : > { %1577 = vmatprep.mubr.msk.f32.mxu0 %vm321_vm0, %v2070_v22  ;;  %1597 = vmatprep.mubr.msk.f32.mxu1 %vm321_vm0, %v1518_v23  ;;  %p1793_p5 = pneg %p1792_p4 }
  0x48   : > { %1071 = vbcast.lane.b32.xlu1 %v1069_v24, 256  ;;  %543 = vbcast.lane.b32.xlu0 %v541_v25, 256 }
  0x49   : > { %p1800_p0 = pnand %p1799_p10, %p1793_p5 }
  0x4a   : > { %1578 = vmatmul.mubr.msk.f32.gmra.mxu0 %vm321_vm0, %v2086_v27  ;;  %1598 = vmatmul.mubr.msk.f32.gmra.mxu1 %vm321_vm0, %v1519_v28 }
  0x4b   : > { %1580 = vmatprep.mubr.msk.f32.mxu0 %vm321_vm0, %v2091_v29  ;;  %1600 = vmatprep.mubr.msk.f32.mxu1 %vm321_vm0, %v1520_v30 }
  0x4c   : > { %1078 = vbcast.lane.b32.xlu1 %v1076_v31, 256  ;;  %550 = vbcast.lane.b32.xlu0 %v548_v32, 256 }
  0x4e   : > { %1581 = vmatmul.mubr.msk.f32.gmra.mxu0 %vm321_vm0, %v2107_v34  ;;  %1601 = vmatmul.mubr.msk.f32.gmra.mxu1 %vm321_vm0, %v1521_v35 }
  0x50   : > { %1085 = vbcast.lane.b32.xlu1 %v1083_v36, 256  ;;  %557 = vbcast.lane.b32.xlu0 %v555_v37, 256 }
  0x54   : > { %1092 = vbcast.lane.b32.xlu1 %v1090_v39, 256  ;;  %564 = vbcast.lane.b32.xlu0 %v562_v40, 256 }
  0x58   : > { %1099 = vbcast.lane.b32.xlu1 %v1097_v42, 256  ;;  %571 = vbcast.lane.b32.xlu0 %v569_v43, 256 }
  0x5c   : > { %1106 = vbcast.lane.b32.xlu1 %v1104_v44, 256 }
  0x60   : > { %1113 = vbcast.lane.b32.xlu1 %v1111_v45, 256 }
  0x74   : > { %s1604_s21 = spop %1603 }
 0x102   : > { %v1573_v48 = vpop.f32.mrf.mxu0  ;;  %v1593_v49 = vpop.f32.mrf.mxu1 }
 0x103   : > { %v418_v50 = vadd.f32 %v1573_v48, %v2139_v47  ;;  %v968_v51 = vadd.f32 %v1593_v49, %v2139_v47 }
 0x104   : > { %v412_v52 = vpop.f32.mrf.mxu0  ;;  %v962_v53 = vpop.f32.mrf.mxu1 }
 0x105   : > { %1658 = vtanh.f32 %v418_v50  ;;  %v413_v54 = vadd.f32 %v2139_v47, %v412_v52  ;;  %v963_v55 = vadd.f32 %v2139_v47, %v962_v53 }
 0x106   : > { %1660 = vtanh.f32 %v968_v51  ;;  %v1576_v56 = vpop.f32.mrf.mxu0  ;;  %v1596_v57 = vpop.f32.mrf.mxu1 }
 0x107   : > { %1662 = vtanh.f32 %v413_v54  ;;  %v428_v58 = vadd.f32 %v1576_v56, %v2139_v47  ;;  %v978_v59 = vadd.f32 %v1596_v57, %v2139_v47 }
 0x108   : > { %1664 = vtanh.f32 %v963_v55  ;;  %v422_v60 = vpop.f32.mrf.mxu0  ;;  %v972_v61 = vpop.f32.mrf.mxu1 }
 0x109   : > { %1666 = vtanh.f32 %v428_v58  ;;  %v423_v62 = vadd.f32 %v2139_v47, %v422_v60  ;;  %v973_v63 = vadd.f32 %v2139_v47, %v972_v61 }
 0x10a   : > { %1668 = vtanh.f32 %v978_v59  ;;  %v1579_v0 = vpop.f32.mrf.mxu0  ;;  %v1599_v2 = vpop.f32.mrf.mxu1 }
 0x10b   : > { %v438_v3 = vadd.f32 %v1579_v0, %v2139_v47  ;;  %1670 = vtanh.f32 %v973_v63  ;;  %v988_v5 = vadd.f32 %v1599_v2, %v2139_v47 }
 0x10c   : > { %1672 = vtanh.f32 %v423_v62  ;;  %v982_v6 = vpop.f32.mrf.mxu1  ;;  %v432_v9 = vpop.f32.mrf.mxu0 }
 0x10d   : > { %1674 = vtanh.f32 %v438_v3  ;;  %v983_v15 = vadd.f32 %v2139_v47, %v982_v6  ;;  %v433_v16 = vadd.f32 %v2139_v47, %v432_v9 }
 0x10e   : > { %1676 = vtanh.f32 %v988_v5  ;;  %v1602_v17 = vpop.f32.mrf.mxu1  ;;  %v1582_v23 = vpop.f32.mrf.mxu0 }
 0x10f   : > { %v448_v28 = vadd.f32 %v1582_v23, %v2139_v47  ;;  %1678 = vtanh.f32 %v983_v15  ;;  %v998_v32 = vadd.f32 %v1602_v17, %v2139_v47 }
 0x110   : > { %1680 = vtanh.f32 %v433_v16  ;;  %v992_v39 = vpop.f32.mrf.mxu1  ;;  %v442_v44 = vpop.f32.mrf.mxu0 }
 0x111   : > { %1682 = vtanh.f32 %v448_v28  ;;  %v993_v49 = vadd.f32 %v2139_v47, %v992_v39  ;;  %v443_v52 = vadd.f32 %v2139_v47, %v442_v44  ;;  %v1859_v39 = vmov 0  }
 0x112   : > { %v1659_v21 = vpop.eup %1658  ;;  %1684 = vtanh.f32 %v998_v32  ;;  %1657 = vset.pattern.permute.xlu0 %v1859_v39  ;;  %1656 = vset.pattern.permute.xlu1 %v1859_v39 }
 0x113   : > { %v1661_v24 = vpop.eup %1660  ;;  %v466_v25 = vmul.f32 %v1659_v21, %v2154_v13  ;;  %1686 = vtanh.f32 %v993_v49 }
 0x114   : > { %v1663_v30 = vpop.eup %1662  ;;  %v1010_v31 = vmul.f32 %v1661_v24, %v2154_v13  ;;  %1688 = vtanh.f32 %v443_v52 }
 0x115   : > { %v1665_v35 = vpop.eup %1664  ;;  %v477_v36 = vsel %vm473_vm1, %v466_v25, 0.0  ;;  %v465_v37 = vmul.f32 %v1663_v30, %v2154_v13 }
 0x116   : > { %v1667_v40 = vpop.eup %1666  ;;  %v1020_v42 = vsel %vm473_vm1, %v1010_v31, 0.0  ;;  %478 = vadd.xlane.f32.xlu0 %v477_v36  ;;  %v1009_v43 = vmul.f32 %v1665_v35, %v2154_v13 }
 0x117   : > { %v1669_v45 = vpop.eup %1668  ;;  %1021 = vadd.xlane.f32.xlu1 %v1020_v42  ;;  %v468_v46 = vmul.f32 %v1667_v40, %v2154_v13  ;;  %v474_v53 = vsel %vm473_vm1, %v465_v37, 0.0  ;;  %v2195_v40 = vsub.s32 7, %v2016_v4 }
 0x118   : > { %v1017_v48 = vsel %vm473_vm1, %v1009_v43, 0.0  ;;  %v1012_v50 = vmul.f32 %v1669_v45, %v2154_v13  ;;  %v1671_v51 = vpop.eup %1670  ;;  %v537_v43 = vpop.permute.xlu1 %536 }
 0x119   : > { %v1673_v54 = vpop.eup %1672  ;;  %v483_v55 = vsel %vm473_vm1, %v468_v46, 0.0  ;;  %v1011_v58 = vmul.f32 %v1671_v51, %v2154_v13  ;;  %v1118_v42 = vrot.slane %v2054_v18, %v2195_v40  ;;  %v2203_v45 = vpop.permute.xlu0 %529 }
 0x11a   : > { %475 = vadd.xlane.f32.xlu0 %v474_v53  ;;  %v1675_v56 = vpop.eup %1674  ;;  %v1026_v57 = vsel %vm473_vm1, %v1012_v50, 0.0  ;;  %v467_v60 = vmul.f32 %v1673_v54, %v2154_v13 }
 0x11b   : > { %1018 = vadd.xlane.f32.xlu1 %v1017_v48  ;;  %v1677_v59 = vpop.eup %1676  ;;  %v470_v47 = vmul.f32 %v1675_v56, %v2154_v13  ;;  %v1023_v61 = vsel %vm473_vm1, %v1011_v58, 0.0  ;;  %v2225_v56 = vstv %s1604_s21 }
 0x11c   : > { %v1014_v62 = vmul.f32 %v1677_v59, %v2154_v13  ;;  %v1679_v63 = vpop.eup %1678  ;;  %v480_v0 = vsel %vm473_vm1, %v467_v60, 0.0  ;;  %v2201_v44 = vpop.permute.xlu1 %1071 }
 0x11d   : > { %v1681_v2 = vpop.eup %1680  ;;  %v489_v3 = vsel %vm473_vm1, %v470_v47, 0.0  ;;  %v1013_v9 = vmul.f32 %v1679_v63, %v2154_v13  ;;  %v2205_v48 = vpop.permute.xlu0 %543 }
 0x11e   : > { %484 = vadd.xlane.f32.xlu0 %v483_v55  ;;  %v1683_v5 = vpop.eup %1682  ;;  %v1032_v6 = vsel %vm473_vm1, %v1014_v62, 0.0  ;;  %v469_v16 = vmul.f32 %v1681_v2, %v2154_v13 }
 0x11f   : > { %1027 = vadd.xlane.f32.xlu1 %v1026_v57  ;;  %v1685_v15 = vpop.eup %1684  ;;  %v472_v17 = vmul.f32 %v1683_v5, %v2154_v13  ;;  %v1029_v21 = vsel %vm473_vm1, %v1013_v9, 0.0 }
 0x120   : > { %v1016_v23 = vmul.f32 %v1685_v15, %v2154_v13  ;;  %v1687_v24 = vpop.eup %1686  ;;  %v486_v25 = vsel %vm473_vm1, %v469_v16, 0.0  ;;  %v1079_v46 = vpop.permute.xlu1 %1078 }
 0x121   : > { %v1689_v28 = vpop.eup %1688  ;;  %v495_v30 = vsel %vm473_vm1, %v472_v17, 0.0  ;;  %v1015_v32 = vmul.f32 %v1687_v24, %v2154_v13  ;;  %v2209_v50 = vpop.permute.xlu0 %550 }
 0x122   : > { %481 = vadd.xlane.f32.xlu0 %v480_v0  ;;  %v1038_v31 = vsel %vm473_vm1, %v1016_v23, 0.0  ;;  %v471_v35 = vmul.f32 %v1689_v28, %v2154_v13  ;;  %v576_v13 = vrot.slane %v2034_v10, %v2195_v40 }
 0x123   : > { %1024 = vadd.xlane.f32.xlu1 %v1023_v61  ;;  %v1035_v36 = vsel %vm473_vm1, %v1015_v32, 0.0 }
 0x124   : > { %v492_v37 = vsel %vm473_vm1, %v471_v35, 0.0  ;;  %v2207_v49 = vpop.permute.xlu1 %1085 }
 0x125   : > { %v2213_v18 = vpop.permute.xlu0 %557 }
 0x126   : > { %490 = vadd.xlane.f32.xlu0 %v489_v3 }
 0x127   : > { %1033 = vadd.xlane.f32.xlu1 %v1032_v6 }
 0x128   : > { %v2211_v51 = vpop.permute.xlu1 %1092 }
 0x129   : > { %v2217_v10 = vpop.permute.xlu0 %564 }
 0x12a   : > { %487 = vadd.xlane.f32.xlu0 %v486_v25 }
 0x12b   : > { %1030 = vadd.xlane.f32.xlu1 %v1029_v21 }
 0x12c   : > { %v2215_v52 = vpop.permute.xlu1 %1099 }
 0x12d   : > { %v2221_v54 = vpop.permute.xlu0 %571 }
 0x12e   : > { %496 = vadd.xlane.f32.xlu0 %v495_v30 }
 0x12f   : > { %1039 = vadd.xlane.f32.xlu1 %v1038_v31 }
 0x130   : > { %v2219_v53 = vpop.permute.xlu1 %1106 }
 0x132   : > { %493 = vadd.xlane.f32.xlu0 %v492_v37 }
 0x133   : > { %1036 = vadd.xlane.f32.xlu1 %v1035_v36 }
 0x134   : > { %v2223_v55 = vpop.permute.xlu1 %1113 }
 0x144   : > { %1120 = vbcast.lane.b32.xlu1 %v1118_v42, 256 }
 0x148   : > { %578 = vbcast.lane.b32.xlu0 %v576_v13, 256 }
 0x19f   : > { %v479_v57 = vpop.xlane.xlu0 %478 }
 0x1a0   : > { %v1022_v58 = vpop.xlane.xlu1 %1021  ;;  %v500_v59 = vadd.f32 %v2225_v56, %v479_v57 }
 0x1a1   : > { %v1042_v60 = vadd.f32 %v1022_v58, %v2225_v56 }
 0x1a2   : > { %v509_v47 = vmul.f32 1.442695, %v500_v59 }
 0x1a3   : > { %v1051_v61 = vmul.f32 1.442695, %v1042_v60  ;;  %v476_v62 = vpop.xlane.xlu0 %475 }
 0x1a4   : > { %1690 = vpow2.f32 %v509_v47  ;;  %v1019_v63 = vpop.xlane.xlu1 %1018  ;;  %v499_v0 = vadd.f32 %v2225_v56, %v476_v62 }
 0x1a5   : > { %1692 = vpow2.f32 %v1051_v61  ;;  %v1041_v2 = vadd.f32 %v1019_v63, %v2225_v56 }
 0x1a6   : > { %v507_v3 = vmul.f32 1.442695, %v499_v0 }
 0x1a7   : > { %v1049_v5 = vmul.f32 1.442695, %v1041_v2  ;;  %v485_v6 = vpop.xlane.xlu0 %484 }
 0x1a8   : > { %1694 = vpow2.f32 %v507_v3  ;;  %v1028_v9 = vpop.xlane.xlu1 %1027  ;;  %v502_v15 = vadd.f32 %v2225_v56, %v485_v6 }
 0x1a9   : > { %1696 = vpow2.f32 %v1049_v5  ;;  %v1044_v16 = vadd.f32 %v1028_v9, %v2225_v56 }
 0x1aa   : > { %v513_v17 = vmul.f32 1.442695, %v502_v15 }
 0x1ab   : > { %v1055_v21 = vmul.f32 1.442695, %v1044_v16  ;;  %v482_v23 = vpop.xlane.xlu0 %481 }
 0x1ac   : > { %1698 = vpow2.f32 %v513_v17  ;;  %v1025_v24 = vpop.xlane.xlu1 %1024  ;;  %v501_v25 = vadd.f32 %v2225_v56, %v482_v23 }
 0x1ad   : > { %1700 = vpow2.f32 %v1055_v21  ;;  %v1043_v28 = vadd.f32 %v1025_v24, %v2225_v56 }
 0x1ae   : > { %v511_v30 = vmul.f32 1.442695, %v501_v25 }
 0x1af   : > { %v1053_v31 = vmul.f32 1.442695, %v1043_v28  ;;  %v491_v32 = vpop.xlane.xlu0 %490 }
 0x1b0   : > { %1702 = vpow2.f32 %v511_v30  ;;  %v1034_v35 = vpop.xlane.xlu1 %1033  ;;  %v504_v36 = vadd.f32 %v2225_v56, %v491_v32 }
 0x1b1   : > { %v1691_v37 = vpop.eup %1690  ;;  %1704 = vpow2.f32 %v1053_v31  ;;  %v1046_v39 = vadd.f32 %v1034_v35, %v2225_v56 }
 0x1b2   : > { %v1693_v42 = vpop.eup %1692  ;;  %v517_v13 = vmul.f32 1.442695, %v504_v36  ;;  %v2237_v57 = vmul.f32 %v1691_v37, %v537_v43 }
 0x1b3   : > { %v1059_v58 = vmul.f32 1.442695, %v1046_v39  ;;  %v488_v59 = vpop.xlane.xlu0 %487  ;;  %v2239_v60 = vmul.f32 %v1693_v42, %v1079_v46 }
 0x1b4   : > { %1706 = vpow2.f32 %v517_v13  ;;  %v1031_v47 = vpop.xlane.xlu1 %1030  ;;  %v503_v61 = vadd.f32 %v2225_v56, %v488_v59  ;;  %608 = vperm.xlu1 %1656, %v2237_v57  }
 0x1b5   : > { %v1695_v62 = vpop.eup %1694  ;;  %1708 = vpow2.f32 %v1059_v58  ;;  %v1045_v63 = vadd.f32 %v1031_v47, %v2225_v56  ;;  %1150 = vperm.xlu0 %1657, %v2239_v60  }
 0x1b6   : > { %v1697_v0 = vpop.eup %1696  ;;  %v515_v2 = vmul.f32 1.442695, %v503_v61  ;;  %v2246_v43 = vmul.f32 %v1695_v62, %v2203_v45 }
 0x1b7   : > { %v1057_v3 = vmul.f32 1.442695, %v1045_v63  ;;  %v497_v46 = vpop.xlane.xlu0 %496  ;;  %v2249_v5 = vmul.f32 %v1697_v0, %v2201_v44 }
 0x1b8   : > { %1710 = vpow2.f32 %v515_v2  ;;  %v1040_v6 = vpop.xlane.xlu1 %1039  ;;  %v506_v16 = vadd.f32 %v2225_v56, %v497_v46 }
 0x1b9   : > { %v1699_v9 = vpop.eup %1698  ;;  %1712 = vpow2.f32 %v1057_v3  ;;  %1147 = vperm.xlu1 %1656, %v2249_v5   ;;  %605 = vperm.xlu0 %1657, %v2246_v43   ;;  %v1048_v45 = vadd.f32 %v1040_v6, %v2225_v56 }
 0x1ba   : > { %v1701_v15 = vpop.eup %1700  ;;  %v2255_v17 = vmul.f32 %v1699_v9, %v2209_v50  ;;  %v521_v31 = vmul.f32 1.442695, %v506_v16  ;;  %v629_v16 = vand.u32 127, %v524_v1 }
 0x1bb   : > { %v494_v21 = vpop.xlane.xlu0 %493  ;;  %v2259_v44 = vmul.f32 %v1701_v15, %v2211_v51  ;;  %v1063_v35 = vmul.f32 1.442695, %v1048_v45 }
 0x1bc   : > { %v1037_v23 = vpop.xlane.xlu1 %1036  ;;  %v505_v24 = vadd.f32 %v2225_v56, %v494_v21 }
 0x1bd   : > { %v1703_v25 = vpop.eup %1702  ;;  %v1047_v28 = vadd.f32 %v1037_v23, %v2225_v56  ;;  %1156 = vperm.xlu0 %1657, %v2259_v44   ;;  %614 = vperm.xlu1 %1656, %v2255_v17   ;;  %v632_v23 = vsub.s32 %v629_v16, %v2016_v4 }
 0x1be   : > { %v1705_v30 = vpop.eup %1704  ;;  %v519_v50 = vmul.f32 1.442695, %v505_v24  ;;  %v2266_v32 = vmul.f32 %v1703_v25, %v2205_v48 }
 0x1bf   : > { %v1061_v36 = vmul.f32 1.442695, %v1047_v28  ;;  %v2269_v51 = vmul.f32 %v1705_v30, %v2207_v49  ;;  %v579_v61 = vpop.permute.xlu0 %578 }
 0x1c0   : > { %1714 = vpow2.f32 %v519_v50 }
 0x1c1   : > { %v1707_v37 = vpop.eup %1706  ;;  %1716 = vpow2.f32 %v1061_v36  ;;  %1153 = vperm.xlu0 %1657, %v2269_v51   ;;  %611 = vperm.xlu1 %1656, %v2266_v32  }
 0x1c2   : > { %v1709_v56 = vpop.eup %1708  ;;  %1718 = vpow2.f32 %v521_v31  ;;  %v2274_v39 = vmul.f32 %v1707_v37, %v2217_v10 }
 0x1c3   : > { %1720 = vpow2.f32 %v1063_v35  ;;  %v2277_v48 = vmul.f32 %v1709_v56, %v2219_v53 }
 0x1c5   : > { %v1711_v42 = vpop.eup %1710  ;;  %1162 = vperm.xlu0 %1657, %v2277_v48   ;;  %620 = vperm.xlu1 %1656, %v2274_v39  }
 0x1c6   : > { %v1713_v49 = vpop.eup %1712  ;;  %v2282_v13 = vmul.f32 %v1711_v42, %v2213_v18  ;;  %v1121_v18 = vpop.permute.xlu1 %1120 }
 0x1c7   : > { %v2285_v58 = vmul.f32 %v1713_v49, %v2215_v52 }
 0x1c9   : > { %1159 = vperm.xlu0 %1657, %v2285_v58   ;;  %617 = vperm.xlu1 %1656, %v2282_v13  }
 0x1cd   : > { %v1715_v10 = vpop.eup %1714 }
 0x1ce   : > { %v1717_v59 = vpop.eup %1716  ;;  %v2290_v53 = vmul.f32 %v1715_v10, %v2221_v54 }
 0x1cf   : > { %v1719_v47 = vpop.eup %1718  ;;  %v2293_v62 = vmul.f32 %v1717_v59, %v2223_v55 }
 0x1d0   : > { %v1721_v63 = vpop.eup %1720  ;;  %623 = vperm.xlu1 %1656, %v2290_v53   ;;  %v2297_v52 = vmul.f32 %v1719_v47, %v579_v61 }
 0x1d1   : > { %1165 = vperm.xlu0 %1657, %v2293_v62   ;;  %v2299_v0 = vmul.f32 %v1721_v63, %v1121_v18 }
 0x1d4   : > { %626 = vperm.xlu1 %1656, %v2297_v52  }
 0x1d5   : > { %1168 = vperm.xlu0 %1657, %v2299_v0  }
 0x22f   : > { %v609_v54 = vpop.permute.xlu1 %608 }
 0x230   : > { %v1151_v2 = vpop.permute.xlu0 %1150  ;;  %v637_v30 = vrot.slane %v609_v54, %v632_v23 }
 0x231   : > { %v1177_v35 = vrot.slane %v1151_v2, %v632_v23 }
 0x234   : > { %v1148_v3 = vpop.permute.xlu1 %1147  ;;  %v606_v46 = vpop.permute.xlu0 %605 }
 0x235   : > { %v633_v24 = vrot.slane %v606_v46, %v632_v23  ;;  %v1173_v25 = vrot.slane %v1148_v3, %v632_v23 }
 0x237   : > { %v663_v37 = vsel %vm662_vm2, %v637_v30, %v633_v24  ;;  %v1202_v56 = vsel %vm662_vm2, %v1177_v35, %v1173_v25 }
 0x238   : > { %v615_v55 = vpop.permute.xlu1 %614  ;;  %v1157_v6 = vpop.permute.xlu0 %1156 }
 0x239   : > { %v645_v49 = vrot.slane %v615_v55, %v632_v23  ;;  %v1185_v59 = vrot.slane %v1157_v6, %v632_v23 }
 0x23c   : > { %v612_v9 = vpop.permute.xlu1 %611  ;;  %v1154_v15 = vpop.permute.xlu0 %1153 }
 0x23d   : > { %v641_v28 = vrot.slane %v612_v9, %v632_v23  ;;  %v1181_v31 = vrot.slane %v1154_v15, %v632_v23 }
 0x23f   : > { %v665_v1 = vsel %vm664_vm3, %v641_v28, %v663_v37  ;;  %v1203_v4 = vsel %vm664_vm3, %v1181_v31, %v1202_v56 }
 0x240   : > { %v621_v45 = vpop.permute.xlu1 %620  ;;  %v1163_v21 = vpop.permute.xlu0 %1162  ;;  %v667_v61 = vsel %vm666_vm4, %v645_v49, %v665_v1  ;;  %v1204_v54 = vsel %vm666_vm4, %v1185_v59, %v1203_v4 }
 0x241   : > { %v653_v3 = vrot.slane %v621_v45, %v632_v23  ;;  %v1193_v55 = vrot.slane %v1163_v21, %v632_v23 }
 0x244   : > { %v618_v50 = vpop.permute.xlu1 %617  ;;  %v1160_v36 = vpop.permute.xlu0 %1159 }
 0x245   : > { %v649_v42 = vrot.slane %v618_v50, %v632_v23  ;;  %v1189_v10 = vrot.slane %v1160_v36, %v632_v23 }
 0x247   : > { %v669_v18 = vsel %vm668_vm5, %v649_v42, %v667_v61  ;;  %v1205_v46 = vsel %vm668_vm5, %v1189_v10, %v1204_v54 }
 0x248   : > { %v671_v24 = vsel %vm670_vm6, %v653_v3, %v669_v18  ;;  %v1206_v30 = vsel %vm670_vm6, %v1193_v55, %v1205_v46 }
 0x24b   : > { %v624_v47 = vpop.permute.xlu1 %623 }
 0x24c   : > { %v1166_v63 = vpop.permute.xlu0 %1165  ;;  %v657_v2 = vrot.slane %v624_v47, %v632_v23 }
 0x24d   : > { %v1197_v9 = vrot.slane %v1166_v63, %v632_v23 }
 0x24e   : > { %v673_v28 = vsel %vm672_vm7, %v657_v2, %v671_v24 }
 0x24f   : > { %v627_v15 = vpop.permute.xlu1 %626  ;;  %v1207_v45 = vsel %vm672_vm7, %v1197_v9, %v1206_v30 }
 0x250   : > { %v661_v16 = vrot.slane %v627_v15, %v632_v23  ;;  %v1169_v6 = vpop.permute.xlu0 %1168 }
 0x251   : > { %v1201_v25 = vrot.slane %v1169_v6, %v632_v23 }
 0x252   : > { %v675_v31 = vsel %vm674_vm8, %v661_v16, %v673_v28 }
 0x253   : > { %v678_v50 = vsel %vm677_vm9, %v675_v31, 0.0  ;;  %v1208_v35 = vsel %vm674_vm8, %v1201_v25, %v1207_v45 }
 0x254   : > { %679 = vadd.xlane.f32.xlu1 %v678_v50  ;;  %v1210_v21 = vsel %vm677_vm9, %v1208_v35, 0.0 }
 0x255   : > { %1211 = vadd.xlane.f32.xlu0 %v1210_v21 }
 0x2dd   : > { %v680_v36 = vpop.xlane.xlu1 %679 }
 0x2de   : > { %v681_v37 = vadd.f32 1e-08, %v680_v36  ;;  %v1212_v4 = vpop.xlane.xlu0 %1211 }
 0x2df   : > { %v1213_v59 = vadd.f32 1e-08, %v1212_v4 }
 0x2e0   : > { %v690_v56 = vrot.slane %v681_v37, %v2028_v7  ;;  %v686_v23 = vrot.slane %v681_v37, %v2037_v11  ;;  %v694_v1 = vrot.slane %v681_v37, %v2060_v19  ;;  %v698_v42 = vrot.slane %v681_v37, %v2081_v26 }
 0x2e1   : > { %v702_v49 = vrot.slane %v681_v37, %v2102_v33  ;;  %v706_v10 = vrot.slane %v681_v37, %v2119_v38  ;;  %v710_v47 = vrot.slane %v681_v37, %v2126_v41  ;;  %v714_v61 = vrot.slane %v681_v37, %v2195_v40 }
 0x2e2   : > { %1722 = vrcp.f32 %v690_v56  ;;  %v1218_v63 = vrot.slane %v1213_v59, %v2037_v11  ;;  %v1222_v18 = vrot.slane %v1213_v59, %v2028_v7  ;;  %v1226_v46 = vrot.slane %v1213_v59, %v2060_v19 }
 0x2e3   : > { %1724 = vrcp.f32 %v686_v23  ;;  %v1230_v15 = vrot.slane %v1213_v59, %v2081_v26  ;;  %v1234_v7 = vrot.slane %v1213_v59, %v2102_v33  ;;  %v1238_v19 = vrot.slane %v1213_v59, %v2119_v38 }
 0x2e4   : > { %1726 = vrcp.f32 %v694_v1  ;;  %v1242_v26 = vrot.slane %v1213_v59, %v2126_v41  ;;  %v1246_v33 = vrot.slane %v1213_v59, %v2195_v40 }
 0x2e5   : > { %1728 = vrcp.f32 %v698_v42 }
 0x2e6   : > { %1730 = vrcp.f32 %v702_v49 }
 0x2e7   : > { %1732 = vrcp.f32 %v706_v10 }
 0x2e8   : > { %1734 = vrcp.f32 %v710_v47 }
 0x2e9   : > { %1736 = vrcp.f32 %v714_v61 }
 0x2ea   : > { %1738 = vrcp.f32 %v1218_v63 }
 0x2eb   : > { %1740 = vrcp.f32 %v1222_v18 }
 0x2ec   : > { %1742 = vrcp.f32 %v1226_v46 }
 0x2ed   : > { %1744 = vrcp.f32 %v1230_v15 }
 0x2ee   : > { %1746 = vrcp.f32 %v1234_v7 }
 0x2ef   : > { %v1723_v54 = vpop.eup %1722  ;;  %1748 = vrcp.f32 %v1238_v19 }
 0x2f0   : > { %v1725_v2 = vpop.eup %1724  ;;  %v726_v3 = vmul.f32 %v1723_v54, %v2237_v57  ;;  %1750 = vrcp.f32 %v1242_v26 }
 0x2f1   : > { %v1727_v9 = vpop.eup %1726  ;;  %v724_v55 = vmul.f32 %v1725_v2, %v2246_v43  ;;  %1752 = vrcp.f32 %v1246_v33 }
 0x2f2   : > { %v1729_v16 = vpop.eup %1728  ;;  %746 = vperm.xlu1 %1656, %v726_v3   ;;  %v728_v11 = vmul.f32 %v1727_v9, %v2266_v32 }
 0x2f3   : > { %741 = vperm.xlu0 %1657, %v724_v55   ;;  %v1731_v6 = vpop.eup %1730  ;;  %v730_v57 = vmul.f32 %v1729_v16, %v2255_v17 }
 0x2f4   : > { %v1733_v24 = vpop.eup %1732  ;;  %v732_v43 = vmul.f32 %v1731_v6, %v2282_v13 }
 0x2f5   : > { %v1735_v25 = vpop.eup %1734  ;;  %v734_v32 = vmul.f32 %v1733_v24, %v2274_v39 }
 0x2f6   : > { %751 = vperm.xlu1 %1656, %v728_v11   ;;  %v1737_v28 = vpop.eup %1736  ;;  %v736_v17 = vmul.f32 %v1735_v25, %v2290_v53 }
 0x2f7   : > { %756 = vperm.xlu0 %1657, %v730_v57   ;;  %v1739_v38 = vpop.eup %1738  ;;  %v738_v30 = vmul.f32 %v1737_v28, %v2297_v52 }
 0x2f8   : > { %v1741_v13 = vpop.eup %1740  ;;  %v1256_v41 = vmul.f32 %v1739_v38, %v2249_v5 }
 0x2f9   : > { %v1743_v31 = vpop.eup %1742  ;;  %v1258_v39 = vmul.f32 %v1741_v13, %v2239_v60 }
 0x2fa   : > { %761 = vperm.xlu1 %1656, %v732_v43   ;;  %v1745_v45 = vpop.eup %1744  ;;  %v1260_v40 = vmul.f32 %v1743_v31, %v2269_v51 }
 0x2fb   : > { %766 = vperm.xlu0 %1657, %v734_v32   ;;  %v1747_v50 = vpop.eup %1746  ;;  %v1262_v53 = vmul.f32 %v1745_v45, %v2259_v44 }
 0x2fc   : > { %v1749_v35 = vpop.eup %1748  ;;  %v1264_v52 = vmul.f32 %v1747_v50, %v2285_v58 }
 0x2fd   : > { %v1751_v21 = vpop.eup %1750  ;;  %v1266_v36 = vmul.f32 %v1749_v35, %v2277_v48 }
 0x2fe   : > { %771 = vperm.xlu1 %1656, %v736_v17   ;;  %v1753_v5 = vpop.eup %1752  ;;  %v1268_v60 = vmul.f32 %v1751_v21, %v2293_v62 }
 0x2ff   : > { %776 = vperm.xlu0 %1657, %v738_v30   ;;  %v1270_v37 = vmul.f32 %v1753_v5, %v2299_v0 }
 0x302   : > { %1273 = vperm.xlu1 %1656, %v1256_v41  }
 0x303   : > { %1278 = vperm.xlu0 %1657, %v1258_v39  }
 0x306   : > { %1283 = vperm.xlu1 %1656, %v1260_v40  }
 0x307   : > { %1288 = vperm.xlu0 %1657, %v1262_v53  }
 0x30a   : > { %1293 = vperm.xlu1 %1656, %v1264_v52  }
 0x30b   : > { %1298 = vperm.xlu0 %1657, %v1266_v36   ;;  %v1754_v36 = vld [vmem:[%s2002_s8 + $0x40] sm:$0xff] }
 0x30e   : > { %1303 = vperm.xlu1 %1656, %v1268_v60  }
 0x30f   : > { %1308 = vperm.xlu0 %1657, %v1270_v37  }
 0x36d   : > { %v747_v51 = vpop.permute.xlu1 %746 }
 0x36e   : > { %v780_v44 = vmul.f32 %v747_v51, %v2040_v12  ;;  %v742_v56 = vpop.permute.xlu0 %741 }
 0x36f   : > { %v779_v23 = vmul.f32 %v742_v56, %v2031_v8 }
 0x370   : > { %v794_v58 = vsel %vm321_vm0, %v780_v44, 0.0  ;;  %v1755_v44 = vld [vmem:[%s2002_s8 + $0x48] sm:$0xff] }
 0x371   : > { %v795_v1 = vrot.slane %v794_v58, 4  ;;  %v787_v48 = vsel %vm321_vm0, %v779_v23, 0.0  ;;  %v752_v42 = vpop.permute.xlu1 %751 }
 0x372   : > { %v788_v49 = vrot.slane %v787_v48, 4  ;;  %v781_v4 = vmul.f32 %v752_v42, %v2046_v14  ;;  %v757_v62 = vpop.permute.xlu0 %756 }
 0x373   : > { %v796_v10 = vadd.f32 %v795_v1, %v794_v58  ;;  %v782_v0 = vmul.f32 %v757_v62, %v2065_v20 }
 0x374   : > { %v789_v59 = vadd.f32 %v788_v49, %v787_v48  ;;  %v801_v47 = vsel %vm321_vm0, %v781_v4, 0.0 }
 0x375   : > { %v797_v12 = vrot.slane %v796_v10, 2  ;;  %v802_v61 = vrot.slane %v801_v47, 4  ;;  %v808_v8 = vsel %vm321_vm0, %v782_v0, 0.0  ;;  %v762_v63 = vpop.permute.xlu1 %761 }
 0x376   : > { %v790_v18 = vrot.slane %v789_v59, 2  ;;  %v809_v54 = vrot.slane %v808_v8, 4  ;;  %v783_v2 = vmul.f32 %v762_v63, %v2070_v22  ;;  %v767_v3 = vpop.permute.xlu0 %766 }
 0x377   : > { %v798_v46 = vadd.f32 %v797_v12, %v796_v10  ;;  %v803_v9 = vadd.f32 %v802_v61, %v801_v47  ;;  %v784_v14 = vmul.f32 %v767_v3, %v2086_v27  ;;  %v1756_v61 = vld [vmem:[%s2002_s8 + $0x50] sm:$0xff] }
 0x378   : > { %v791_v55 = vadd.f32 %v790_v18, %v789_v59  ;;  %v810_v15 = vadd.f32 %v809_v54, %v808_v8  ;;  %v815_v20 = vsel %vm321_vm0, %v783_v2, 0.0 }
 0x379   : > { %v799_v16 = vrot.slane %v798_v46, 1  ;;  %v804_v11 = vrot.slane %v803_v9, 2  ;;  %v816_v7 = vrot.slane %v815_v20, 4  ;;  %v822_v6 = vsel %vm321_vm0, %v784_v14, 0.0  ;;  %v772_v57 = vpop.permute.xlu1 %771  ;;  %v1757_v14 = vld [vmem:[%s2002_s8 + $0x58] sm:$0xff] }
 0x37a   : > { %v792_v19 = vrot.slane %v791_v55, 1  ;;  %v811_v24 = vrot.slane %v810_v15, 2  ;;  %v823_v43 = vrot.slane %v822_v6, 4  ;;  %v785_v22 = vmul.f32 %v772_v57, %v2091_v29  ;;  %v777_v26 = vpop.permute.xlu0 %776 }
 0x37b   : > { %v800_v25 = vadd.f32 %v799_v16, %v798_v46  ;;  %v805_v32 = vadd.f32 %v804_v11, %v803_v9  ;;  %v817_v33 = vadd.f32 %v816_v7, %v815_v20  ;;  %v786_v27 = vmul.f32 %v777_v26, %v2107_v34 }
 0x37c   : > { %v793_v28 = vadd.f32 %v792_v19, %v791_v55  ;;  %v812_v17 = vadd.f32 %v811_v24, %v810_v15  ;;  %v824_v38 = vadd.f32 %v823_v43, %v822_v6  ;;  %v829_v30 = vsel %vm321_vm0, %v785_v22, 0.0  ;;  %v1758_v43 = vld [vmem:[%s2002_s8 + $0x60] sm:$0xff] }
 0x37d   : > { %v806_v13 = vrot.slane %v805_v32, 1  ;;  %v818_v41 = vrot.slane %v817_v33, 2  ;;  %v830_v31 = vrot.slane %v829_v30, 4  ;;  %v836_v39 = vsel %vm321_vm0, %v786_v27, 0.0  ;;  %v1274_v45 = vpop.permute.xlu1 %1273 }
 0x37e   : > { %v851_v29 = vsel %vm662_vm2, %v800_v25, %v793_v28  ;;  %v813_v40 = vrot.slane %v812_v17, 1  ;;  %v825_v50 = vrot.slane %v824_v38, 2  ;;  %v837_v53 = vrot.slane %v836_v39, 4  ;;  %v1279_v35 = vpop.permute.xlu0 %1278 }
 0x37f   : > { %v807_v34 = vadd.f32 %v806_v13, %v805_v32  ;;  %v819_v52 = vadd.f32 %v818_v41, %v817_v33  ;;  %v831_v21 = vadd.f32 %v830_v31, %v829_v30  ;;  %v1311_v5 = vmul.f32 %v1754_v36, %v1274_v45 }
 0x380   : > { %v814_v60 = vadd.f32 %v813_v40, %v812_v17  ;;  %v826_v37 = vadd.f32 %v825_v50, %v824_v38  ;;  %v838_v51 = vadd.f32 %v837_v53, %v836_v39  ;;  %v1312_v56 = vmul.f32 %v1755_v44, %v1279_v35  ;;  %v1759_v38 = vld [vmem:[%s2002_s8 + $0x68] sm:$0xff]  ;;  %v1760_v35 = vld [vmem:[%s2002_s8 + $0x70] sm:$0xff]  ;;  %v1761_v44 = vld [vmem:[%s2002_s8 + $0x78] sm:$0xff]  ;;  %s1538_s8 = sshll.u32 %s1922_s5, 8  ;;  %s1394_s5 = scalar_lea.sflag [#allocation5], %s1998_s27 }
 0x381   : > { %v852_v23 = vsel %vm664_vm3, %v807_v34, %v851_v29  ;;  %v820_v58 = vrot.slane %v819_v52, 1  ;;  %v832_v1 = vrot.slane %v831_v21, 2  ;;  %v1319_v48 = vsel %vm321_vm0, %v1311_v5, 0.0  ;;  %v1284_v42 = vpop.permute.xlu1 %1283  ;;  %s2408_s16 = scalar_lea.hbm %s2462_s6, %s1538_s8 }
 0x382   : > { %v853_v49 = vsel %vm666_vm4, %v814_v60, %v852_v23  ;;  %v827_v4 = vrot.slane %v826_v37, 1  ;;  %v839_v62 = vrot.slane %v838_v51, 2  ;;  %v1320_v10 = vrot.slane %v1319_v48, 4  ;;  %v1289_v0 = vpop.permute.xlu0 %1288 }
 0x383   : > { %v821_v59 = vadd.f32 %v820_v58, %v819_v52  ;;  %v833_v47 = vadd.f32 %v832_v1, %v831_v21  ;;  %v1326_v12 = vsel %vm321_vm0, %v1312_v56, 0.0  ;;  %v1313_v8 = vmul.f32 %v1756_v61, %v1284_v42 }
 0x384   : > { %v828_v63 = vadd.f32 %v827_v4, %v826_v37  ;;  %v840_v18 = vadd.f32 %v839_v62, %v838_v51  ;;  %v1321_v54 = vadd.f32 %v1320_v10, %v1319_v48  ;;  %v1327_v2 = vrot.slane %v1326_v12, 4 }
 0x385   : > { %v854_v3 = vsel %vm668_vm5, %v821_v59, %v853_v49  ;;  %v834_v46 = vrot.slane %v833_v47, 1  ;;  %v1333_v9 = vsel %vm321_vm0, %v1313_v8, 0.0  ;;  %v1314_v55 = vmul.f32 %v1757_v14, %v1289_v0  ;;  %v1294_v15 = vpop.permute.xlu1 %1293 }
 0x386   : > { %v855_v20 = vsel %vm670_vm6, %v828_v63, %v854_v3  ;;  %v841_v16 = vrot.slane %v840_v18, 1  ;;  %v1322_v11 = vrot.slane %v1321_v54, 2  ;;  %v1328_v7 = vadd.f32 %v1327_v2, %v1326_v12  ;;  %v1299_v6 = vpop.permute.xlu0 %1298 }
 0x387   : > { %v835_v57 = vadd.f32 %v834_v46, %v833_v47  ;;  %v1334_v19 = vrot.slane %v1333_v9, 4  ;;  %v1340_v24 = vsel %vm321_vm0, %v1314_v55, 0.0  ;;  %v1315_v22 = vmul.f32 %v1758_v43, %v1294_v15 }
 0x388   : > { %v842_v26 = vadd.f32 %v841_v16, %v840_v18  ;;  %v1323_v25 = vadd.f32 %v1322_v11, %v1321_v54  ;;  %v1329_v32 = vrot.slane %v1328_v7, 2  ;;  %v1341_v33 = vrot.slane %v1340_v24, 4 }
 0x389   : > { %v856_v27 = vsel %vm672_vm7, %v835_v57, %v855_v20  ;;  %v1335_v28 = vadd.f32 %v1334_v19, %v1333_v9  ;;  %v1347_v17 = vsel %vm321_vm0, %v1315_v22, 0.0  ;;  %v1316_v30 = vmul.f32 %v1759_v38, %v1299_v6  ;;  %v1304_v13 = vpop.permute.xlu1 %1303 }
 0x38a   : > { %v857_v41 = vsel %vm674_vm8, %v842_v26, %v856_v27  ;;  %v1324_v31 = vrot.slane %v1323_v25, 1  ;;  %v1330_v39 = vadd.f32 %v1329_v32, %v1328_v7  ;;  %v1342_v45 = vadd.f32 %v1341_v33, %v1340_v24  ;;  %v1309_v29 = vpop.permute.xlu0 %1308 }
 0x38b   : > { %v1336_v40 = vrot.slane %v1335_v28, 2  ;;  %v1348_v50 = vrot.slane %v1347_v17, 4  ;;  %v1354_v53 = vsel %vm321_vm0, %v1316_v30, 0.0  ;;  %v1317_v34 = vmul.f32 %v1760_v35, %v1304_v13  ;;  %859 = vst.msk [vmem:[%s2390_s12] sm:$0xff] %vm321_vm0, %v857_v41 }
 0x38c   : > { %v1325_v52 = vadd.f32 %v1324_v31, %v1323_v25  ;;  %v1331_v21 = vrot.slane %v1330_v39, 1  ;;  %v1343_v36 = vrot.slane %v1342_v45, 2  ;;  %v1355_v5 = vrot.slane %v1354_v53, 4 }
 0x38d   : > { %v1337_v60 = vadd.f32 %v1336_v40, %v1335_v28  ;;  %v1349_v37 = vadd.f32 %v1348_v50, %v1347_v17  ;;  %v1361_v51 = vsel %vm321_vm0, %v1317_v34, 0.0  ;;  %v1318_v56 = vmul.f32 %v1761_v44, %v1309_v29 }
 0x38e   : > { %v1332_v23 = vadd.f32 %v1331_v21, %v1330_v39  ;;  %v1344_v58 = vadd.f32 %v1343_v36, %v1342_v45  ;;  %v1356_v1 = vadd.f32 %v1355_v5, %v1354_v53  ;;  %v1362_v48 = vrot.slane %v1361_v51, 4 }
 0x38f   : > { %v1338_v42 = vrot.slane %v1337_v60, 1  ;;  %v1350_v49 = vrot.slane %v1349_v37, 2  ;;  %v1368_v4 = vsel %vm321_vm0, %v1318_v56, 0.0 }
 0x390   : > { %v1345_v62 = vrot.slane %v1344_v58, 1  ;;  %v1357_v10 = vrot.slane %v1356_v1, 2  ;;  %v1363_v0 = vadd.f32 %v1362_v48, %v1361_v51  ;;  %v1369_v12 = vrot.slane %v1368_v4, 4 }
 0x391   : > { %v1339_v59 = vadd.f32 %v1338_v42, %v1337_v60  ;;  %v1351_v47 = vadd.f32 %v1350_v49, %v1349_v37  ;;  %v1383_v61 = vsel %vm662_vm2, %v1332_v23, %v1325_v52 }
 0x392   : > { %v1346_v8 = vadd.f32 %v1345_v62, %v1344_v58  ;;  %v1358_v63 = vadd.f32 %v1357_v10, %v1356_v1  ;;  %v1364_v18 = vrot.slane %v1363_v0, 2  ;;  %v1370_v3 = vadd.f32 %v1369_v12, %v1368_v4 }
 0x393   : > { %v1384_v54 = vsel %vm664_vm3, %v1339_v59, %v1383_v61  ;;  %v1352_v2 = vrot.slane %v1351_v47, 1 }
 0x394   : > { %v1359_v46 = vrot.slane %v1358_v63, 1  ;;  %v1365_v9 = vadd.f32 %v1364_v18, %v1363_v0  ;;  %v1371_v55 = vrot.slane %v1370_v3, 2  ;;  %v1385_v15 = vsel %vm666_vm4, %v1346_v8, %v1384_v54 }
 0x395   : > { %v1353_v14 = vadd.f32 %v1352_v2, %v1351_v47 }
 0x396   : > { %v1360_v20 = vadd.f32 %v1359_v46, %v1358_v63  ;;  %v1366_v16 = vrot.slane %v1365_v9, 1  ;;  %v1372_v7 = vadd.f32 %v1371_v55, %v1370_v3 }
 0x397   : > { %v1386_v11 = vsel %vm668_vm5, %v1353_v14, %v1385_v15 }
 0x398   : > { %v1367_v6 = vadd.f32 %v1366_v16, %v1365_v9  ;;  %v1387_v57 = vsel %vm670_vm6, %v1360_v20, %v1386_v11  ;;  %v1373_v19 = vrot.slane %v1372_v7, 1 }
 0x39a   : > { %v1388_v24 = vsel %vm672_vm7, %v1367_v6, %v1387_v57  ;;  %v1374_v43 = vadd.f32 %v1373_v19, %v1372_v7 }
 0x39c   : > { %v1389_v22 = vsel %vm674_vm8, %v1374_v43, %v1388_v24 }
 0x39d   : > { %1531 = vst.msk [vmem:[%s2390_s12 + $0x8] sm:$0xff] %vm321_vm0, %v1389_v22 }
 0x39e   : > { %1803 = shalt.err (!%p1800_p0)
}
 0x39f   : > { %s1804_s17 = scalar_lea.hbm %s2408_s16, 256  ;;  %s1808_s21 = scalar_lea.hbm %s2462_s6, 512 }
 0x3a0   : > { %p1805_p2 = scmp.ne.s32.totalorder %s2408_s16, %s1804_s17  ;;  %p1809_p3 = scmp.lt.s32.totalorder %s2408_s16, %s2462_s6 }
 0x3a1   : > { %p1810_p6 = scmp.lt.s32.totalorder %s1808_s21, %s1804_s17 }
 0x3a2   : > { %p1806_p9 = pnand %p1805_p2, %p2471_p13 }
 0x3a3   : > { %p1811_p11 = por %p1810_p6, %p1809_p3 }
 0x3a4   : > { %p1807_p1 = pneg %p1806_p9 }
 0x3a6   : > { %p1812_p12 = pnand %p1811_p11, %p1807_p1 }
 0x3a8   : > { %1815 = shalt.err (!%p1812_p12)
}
 0x3a9   : > { %s1861_s8 = smov 128   ;;  %s1862_s14 = smov 8  }
 0x3aa   : > { %1607 = dma.vmem_to_hbm [thread:$0]  (%p2471_p13), %s2410_s9, 256, %s2408_s16, %s1394_s5, %s1861_s8, %s1861_s8, %s1862_s14  }
 0x3ab PF: > { %s1422_s15 = sand.u32 1, %s1842_s23   ;;  %p2472_p4 = scmp.ne.s32.totalorder %s2468_s11, 0 }
 0x3ac   : > { %p2473_p5 = scmp.ge.s32.totalorder %s1854_s26, 2  ;;  %s1423_s18 = scalar_lea.sflag [#allocation5], %s1422_s15 }
 0x3ae   : > { %p1614_p7 = pnand %p2473_p5, %p2472_p4 }
 0x3b0   : > { %p1615_p8 = pneg %p1614_p7 }
 0x3b2   : > { %1837 = dma.done.wait (%p1615_p8), %s1423_s18, 256  }
 0x3b3   : > { %1839 = vsyncadd (%p1615_p8), %s1423_s18, 4294967040  ;;  %p21_p10 = scmp.ge.s32.totalorder %s1926_s28, 4   ;;  %s2474_s23 = smov %s1846_s24 }
 0x3b4   : > { %s2475_s24 = smov %s1850_s25  ;;  %s2476_s25 = smov %s1938_s7 }
 0x3b5   : > { %s2477_s26 = smov %s1926_s28  ;;  %23 = sbr.rel (!%p21_p10) target bundleno = 8 (0x8), region = 96 }
 0x3ba   :  { %1428 = vsyncpa [#allocation4], 1 }
 0x3bb   :  { %1430 = vsyncpa [#allocation4 + $0x1], 1 }
 0x3bc   :  { %1431 = vsyncpa [#allocation5], 1 }
 0x3bd   :  { %1433 = vsyncpa [#allocation5 + $0x1], 1 }

</bundles_post_ra>
